<compile_context>
chip_gen: v7x
topology: tpu7x:2x2x1
jax: 0.10.0
libtpu: 0.0.40
codegen_flags: <defaults>
</compile_context>

<pallas_src>
import functools

import jax
import jax.numpy as jnp
from jax.experimental import pallas as pl
from jax.experimental.pallas import tpu as pltpu


def _round_up(n, m):
    return ((n + m - 1) // m) * m


def _ffn_kernel(x_ref, w1_ref, b1_ref, w2_ref, b2_ref, o_ref):
    # x_ref: (tm, Hp) native dtype; w1_ref/w2_ref: (Hp, Hp) native dtype,
    # already transposed so y = x @ W; b1_ref/b2_ref: (1, Hp) float32.
    x = x_ref[...]                                            # native dtype (MXU input)
    h = jnp.dot(x, w1_ref[...], preferred_element_type=jnp.float32)
    h = jnp.maximum(h + b1_ref[...], 0.0)                     # bias + ReLU in f32
    y = jnp.dot(h.astype(w2_ref.dtype), w2_ref[...],
                preferred_element_type=jnp.float32)
    y = y + b2_ref[...] + x.astype(jnp.float32)               # bias + residual in f32
    o_ref[...] = y.astype(o_ref.dtype)                        # single cast at store


def prepare_ffn_params(w1, b1, w2, b2, dtype):
    """One-time weight prep (call at model init, NOT per forward step).

    w1, w2: (H_out, H_in) PyTorch Conv1d weights with the kernel dim squeezed;
    b1, b2: (H,).  Returns pre-transposed, 128-lane-padded params so the kernel
    does plain row-major matmuls with no per-call weight HBM round trips.
    """
    H = w1.shape[0]
    Hp = _round_up(H, 128)
    ph = Hp - H
    w1t = jnp.pad(w1.T.astype(dtype), ((0, ph), (0, ph)))
    w2t = jnp.pad(w2.T.astype(dtype), ((0, ph), (0, ph)))
    b1r = jnp.pad(b1.astype(jnp.float32), (0, ph)).reshape(1, Hp)
    b2r = jnp.pad(b2.astype(jnp.float32), (0, ph)).reshape(1, Hp)
    return w1t, b1r, w2t, b2r


@functools.partial(jax.jit, static_argnames=("tm",))
def pointwise_ffn(x, w1t, b1r, w2t, b2r, *, tm=512):
    """x: (B, L, H); w1t/b1r/w2t/b2r from prepare_ffn_params(). Returns (B, L, H)."""
    B, L, H = x.shape
    M = B * L
    Hp = w1t.shape[0]
    pad_h = Hp - H

    # Row tile: multiple of 8, no larger than the (8-rounded) token count, and
    # small enough that the grid has >= 2 steps so both v7x TensorCores work.
    tm = max(8, _round_up(tm, 8))
    tm_eff = min(tm, _round_up(M, 8))
    if pl.cdiv(M, tm_eff) < 2 and tm_eff > 8:
        tm_eff = max(8, _round_up(pl.cdiv(tm_eff, 2), 8))
    grid = (pl.cdiv(M, tm_eff),)        # M tail handled by a masked final block

    # Token-major activations; pad lanes only when H isn't already 128-aligned.
    x2 = x.reshape(M, H)
    if pad_h:
        x2 = jnp.pad(x2, ((0, 0), (0, pad_h)))

    itemsize = jnp.dtype(x.dtype).itemsize
    cost = pl.CostEstimate(
        flops=4 * M * Hp * Hp,                               # two (M,Hp)@(Hp,Hp) matmuls
        transcendentals=0,
        bytes_accessed=(2 * M * Hp + 2 * Hp * Hp) * itemsize + 2 * Hp * 4,
    )

    # Double-buffered x + out tiles, single-buffered resident weights, biases, slack.
    vmem_bytes = (2 * 2 * tm_eff * Hp * itemsize
                  + 2 * Hp * Hp * itemsize
                  + 2 * Hp * 4
                  + (2 << 20))
    vmem_limit = int(min(max(vmem_bytes, 32 << 20), 64 << 20))

    resident = dict(pipeline_mode=pl.Buffered(1))            # constant block index

    out = pl.pallas_call(
        _ffn_kernel,
        out_shape=jax.ShapeDtypeStruct((M, Hp), x.dtype),
        grid_spec=pltpu.PrefetchScalarGridSpec(
            num_scalar_prefetch=0,
            grid=grid,
            in_specs=[
                pl.BlockSpec((tm_eff, Hp), lambda i: (i, 0)),           # x (streams)
                pl.BlockSpec((Hp, Hp), lambda i: (0, 0), **resident),   # W1^T (resident)
                pl.BlockSpec((1, Hp), lambda i: (0, 0), **resident),    # b1 (f32)
                pl.BlockSpec((Hp, Hp), lambda i: (0, 0), **resident),   # W2^T (resident)
                pl.BlockSpec((1, Hp), lambda i: (0, 0), **resident),    # b2 (f32)
            ],
            out_specs=pl.BlockSpec((tm_eff, Hp), lambda i: (i, 0)),     # lane-dense store
        ),
        compiler_params=pltpu.CompilerParams(
            dimension_semantics=("parallel",),
            vmem_limit_bytes=vmem_limit),
        cost_estimate=cost,
    )(x2, w1t, b1r, w2t, b2r)

    if pad_h:
        out = out[:, :H]
    return out.reshape(B, L, H)


def _reference(x, w1, b1, w2, b2):
    # Pure-JAX reference matching PyTorch eval-mode forward.
    h = jnp.maximum(jnp.einsum("blh,oh->blo", x, w1) + b1, 0.0)
    y = jnp.einsum("blh,oh->blo", h, w2) + b2
    return y + x


if __name__ == "__main__":
    B, L, H = 2, 8, 32  # batch, seq, hidden_units
    key = jax.random.PRNGKey(0)
    kx, kw1, kb1, kw2, kb2 = jax.random.split(key, 5)

    x = jax.random.normal(kx, (B, L, H), dtype=jnp.float32)
    # Conv1d(H, H, kernel_size=1) weights: (out, in, 1) -> squeeze to (out, in)
    w1 = jax.random.normal(kw1, (H, H), dtype=jnp.float32) * 0.05
    b1 = jax.random.normal(kb1, (H,), dtype=jnp.float32) * 0.05
    w2 = jax.random.normal(kw2, (H, H), dtype=jnp.float32) * 0.05
    b2 = jax.random.normal(kb2, (H,), dtype=jnp.float32) * 0.05

    # One-time weight prep (hoisted out of the per-call path).
    params = prepare_ffn_params(w1, b1, w2, b2, dtype=x.dtype)

    out = pointwise_ffn(x, *params)
    out = jax.block_until_ready(out)

    ref = _reference(x, w1, b1, w2, b2)
    assert out.shape == (B, L, H)
    assert jnp.allclose(out, ref, atol=1e-4, rtol=1e-4), "mismatch vs reference"

    print("KERNEL_OK")
</pallas_src>

<mosaic_0001>
module attributes {stable_mosaic.version = 11 : i64} {
  func.func @_ffn_kernel(%arg0: i32, %arg1: memref<8x128xf32, #tpu.memory_space<vmem>>, %arg2: memref<128x128xf32, #tpu.memory_space<vmem>>, %arg3: memref<1x128xf32, #tpu.memory_space<vmem>>, %arg4: memref<128x128xf32, #tpu.memory_space<vmem>>, %arg5: memref<1x128xf32, #tpu.memory_space<vmem>>, %arg6: memref<8x128xf32, #tpu.memory_space<vmem>>) attributes {dimension_semantics = [#tpu.dimension_semantics<parallel>], iteration_bounds = array<i64: 2>, scalar_prefetch = 0 : i64, scratch_operands = 0 : i64, tpu.core_type = #tpu.core_type<tc>, window_params = [{transform_indices = @transform_0, window_bounds = array<i64: 8, 128>}, {pipeline_mode = #tpu.pipeline_mode<synchronous>, transform_indices = @transform_1, window_bounds = array<i64: 128, 128>}, {pipeline_mode = #tpu.pipeline_mode<synchronous>, transform_indices = @transform_2, window_bounds = array<i64: 1, 128>}, {pipeline_mode = #tpu.pipeline_mode<synchronous>, transform_indices = @transform_3, window_bounds = array<i64: 128, 128>}, {pipeline_mode = #tpu.pipeline_mode<synchronous>, transform_indices = @transform_4, window_bounds = array<i64: 1, 128>}, {transform_indices = @transform_5, window_bounds = array<i64: 8, 128>}]} {
    %c0 = arith.constant 0 : index
    %c0_0 = arith.constant 0 : index
    %0 = vector.load %arg1[%c0, %c0_0] : memref<8x128xf32, #tpu.memory_space<vmem>>, vector<8x128xf32>
    %c0_1 = arith.constant 0 : index
    %c0_2 = arith.constant 0 : index
    %1 = vector.load %arg2[%c0_1, %c0_2] : memref<128x128xf32, #tpu.memory_space<vmem>>, vector<128x128xf32>
    %cst = arith.constant dense<0.000000e+00> : vector<8x128xf32>
    %2 = tpu.matmul %0, %1, %cst {dimension_numbers = #tpu.dot_dimension_numbers<[1], [0], [0], [1], [0, 0, 1, 1], [], []>} : vector<8x128xf32>, vector<128x128xf32>, vector<8x128xf32> -> vector<8x128xf32>
    %c0_3 = arith.constant 0 : index
    %c0_4 = arith.constant 0 : index
    %3 = vector.load %arg3[%c0_3, %c0_4] : memref<1x128xf32, #tpu.memory_space<vmem>>, vector<1x128xf32>
    %4 = vector.broadcast %3 : vector<1x128xf32> to vector<8x128xf32>
    %5 = arith.addf %2, %4 : vector<8x128xf32>
    %cst_5 = arith.constant 0.000000e+00 : f32
    %6 = vector.broadcast %cst_5 : f32 to vector<8x128xf32>
    %7 = arith.maximumf %5, %6 : vector<8x128xf32>
    %c0_6 = arith.constant 0 : index
    %c0_7 = arith.constant 0 : index
    %8 = vector.load %arg4[%c0_6, %c0_7] : memref<128x128xf32, #tpu.memory_space<vmem>>, vector<128x128xf32>
    %cst_8 = arith.constant dense<0.000000e+00> : vector<8x128xf32>
    %9 = tpu.matmul %7, %8, %cst_8 {dimension_numbers = #tpu.dot_dimension_numbers<[1], [0], [0], [1], [0, 0, 1, 1], [], []>} : vector<8x128xf32>, vector<128x128xf32>, vector<8x128xf32> -> vector<8x128xf32>
    %c0_9 = arith.constant 0 : index
    %c0_10 = arith.constant 0 : index
    %10 = vector.load %arg5[%c0_9, %c0_10] : memref<1x128xf32, #tpu.memory_space<vmem>>, vector<1x128xf32>
    %11 = vector.broadcast %10 : vector<1x128xf32> to vector<8x128xf32>
    %12 = arith.addf %9, %11 : vector<8x128xf32>
    %13 = arith.addf %12, %0 : vector<8x128xf32>
    %c0_11 = arith.constant 0 : index
    %c0_12 = arith.constant 0 : index
    %14 = vector.load %arg6[%c0_11, %c0_12] : memref<8x128xf32, #tpu.memory_space<vmem>>, vector<8x128xf32>
    tpu.vector_store %arg6[%c0_11, %c0_12], %13 {strides = array<i32>} : memref<8x128xf32, #tpu.memory_space<vmem>>, vector<8x128xf32>,
    return
  }
  func.func @transform_0(%arg0: i32) -> (i32, i32) {
    %c0_i32 = arith.constant 0 : i32
    %c0_i32_0 = arith.constant 0 : i32
    return %arg0, %c0_i32 : i32, i32
  }
  func.func @transform_1(%arg0: i32) -> (i32, i32) {
    %c0_i32 = arith.constant 0 : i32
    %c0_i32_0 = arith.constant 0 : i32
    %c0_i32_1 = arith.constant 0 : i32
    return %c0_i32, %c0_i32_0 : i32, i32
  }
  func.func @transform_2(%arg0: i32) -> (i32, i32) {
    %c0_i32 = arith.constant 0 : i32
    %c0_i32_0 = arith.constant 0 : i32
    %c0_i32_1 = arith.constant 0 : i32
    return %c0_i32, %c0_i32_0 : i32, i32
  }
  func.func @transform_3(%arg0: i32) -> (i32, i32) {
    %c0_i32 = arith.constant 0 : i32
    %c0_i32_0 = arith.constant 0 : i32
    %c0_i32_1 = arith.constant 0 : i32
    return %c0_i32, %c0_i32_0 : i32, i32
  }
  func.func @transform_4(%arg0: i32) -> (i32, i32) {
    %c0_i32 = arith.constant 0 : i32
    %c0_i32_0 = arith.constant 0 : i32
    %c0_i32_1 = arith.constant 0 : i32
    return %c0_i32, %c0_i32_0 : i32, i32
  }
  func.func @transform_5(%arg0: i32) -> (i32, i32) {
    %c0_i32 = arith.constant 0 : i32
    %c0_i32_0 = arith.constant 0 : i32
    return %arg0, %c0_i32 : i32, i32
  }
}

</mosaic_0001>

<bundles_post_ra>
// kernel: pointwise_ffn.1
= control target key start
LH: loop header
LB: loop body
LE: loop exit
PB: predicated region body
PF: predicated region fallthrough
CT: control target
= control target key end

     0   :  { %10 = vsyncpa [#allocation3], 0  ;;  %s947_s0 = inlined_call_operand.vmem [shape: f32[16,128], index: 0, kind: input, shape index: {}]   ;;  %s948_s1 = inlined_call_operand.hbm [shape: f32[128,128], index: 1, kind: input, shape index: {}]   ;;  %s949_s2 = inlined_call_operand.vmem [shape: f32[1,128], index: 2, kind: input, shape index: {}]   ;;  %s950_s3 = inlined_call_operand.hbm [shape: f32[128,128], index: 3, kind: input, shape index: {}]   ;;  %s951_s4 = inlined_call_operand.vmem [shape: f32[1,128], index: 4, kind: input, shape index: {}]   ;;  %s952_s5 = inlined_call_operand.vmem [shape: f32[16,128], index: 5, kind: output, shape index: {}]  }
   0x1   :  { %11 = vsyncpa [#allocation5], 0  ;;  %s825_s18 = smov 0  }
   0x2 LB: > { %s831_s19 = sadd.s32 4294967295, %s786_s18   ;;  %p517_p0 = scmp.ge.s32.totalorder %s786_s18, 1  ;;  %s786_s18 = sphi %s825_s18, %s17_s18  }
   0x3   : > { %p158_p1 = scmp.lt.s32.totalorder %s786_s18, 3  ;;  %s788_s20 = smov [#allocation2]  }
   0x4   : > { %s170_s21 = sshll.u32 %s788_s20, 4  ;;  %p953_p3 = scmp.eq.s32.totalorder %s831_s19, 0  ;;  %s171_s21 = int_to_ptr.vmem [resolvable:$true] %s170_s21 }
   0x5   : > { %p835_p2 = pnand %p517_p0, %p158_p1  ;;  %s789_s23 = smov [#allocation4]  }
   0x6   : > { %s186_s24 = sshll.u32 %s789_s23, 4  ;;  %s716_s28 = scalar_lea.hbm %s948_s1, 2048  ;;  %s848_s24 = int_to_ptr.vmem [resolvable:$true] %s186_s24 }
   0x7   : > { %s955_s22 = scalar_select %p835_p2, 1, 0 }
   0x8   : > { %p690_p4 = pneg %p835_p2  ;;  %p717_p6 = scmp.ne.s32.totalorder %s948_s1, %s716_s28 }
   0x9   : > { %p723_p10 = scmp.lt.u32.totalorder %s716_s28, %s948_s1 }
   0xa   : > { %p844_p5 = pnand %p953_p3, %p690_p4 }
   0xc   : > { %p718_p7 = pneg %p844_p5 }
   0xe   : > { %p719_p8 = pnand %p718_p7, %p717_p6 }
  0x10   : > { %p720_p9 = pneg %p719_p8 }
  0x12   : > { %p725_p11 = pnand %p723_p10, %p720_p9 }
  0x14   : > { %728 = shalt.err (!%p725_p11)
}
  0x15   : > { %s729_s8 = scalar_lea.vmem %s171_s21, 2048  ;;  %p737_p1 = scmp.lt.s32.totalorder %s171_s21, %s171_s21 }
  0x16   : > { %p730_p12 = scmp.ne.s32.totalorder %s171_s21, %s729_s8  ;;  %p738_p4 = scmp.lt.s32.totalorder %s729_s8, %s729_s8 }
  0x18   : > { %p732_p13 = pnand %p730_p12, %p718_p7  ;;  %p739_p3 = por %p738_p4, %p737_p1 }
  0x1a   : > { %p733_p0 = pneg %p732_p13 }
  0x1c   : > { %p740_p2 = pnand %p739_p3, %p733_p0 }
  0x1e   : > { %743 = shalt.err (!%p740_p2)
}
  0x1f   : > { %s790_s9 = smov 128   ;;  %s791_s10 = smov 8  }
  0x20   : > { %693 = dma.hbm_to_vmem [thread:$0]  (!%p844_p5), %s948_s1, 2048, %s171_s21, [#allocation3], %s790_s9, %s790_s9, %s791_s10  }
  0x21   : > { %s744_s15 = scalar_lea.hbm %s950_s3, 2048 }
  0x22   : > { %p745_p6 = scmp.ne.s32.totalorder %s950_s3, %s744_s15  ;;  %p751_p8 = scmp.lt.u32.totalorder %s744_s15, %s950_s3 }
  0x24   : > { %p747_p2 = pnand %p745_p6, %p718_p7 }
  0x26   : > { %p748_p3 = pneg %p747_p2 }
  0x28   : > { %p753_p9 = pnand %p751_p8, %p748_p3 }
  0x2a   : > { %756 = shalt.err (!%p753_p9)
}
  0x2b   : > { %s757_s21 = scalar_lea.vmem %s848_s24, 2048  ;;  %p765_p13 = scmp.lt.s32.totalorder %s848_s24, %s848_s24 }
  0x2c   : > { %p758_p10 = scmp.ne.s32.totalorder %s848_s24, %s757_s21  ;;  %p766_p0 = scmp.lt.s32.totalorder %s757_s21, %s757_s21 }
  0x2e   : > { %p760_p11 = pnand %p758_p10, %p718_p7  ;;  %p767_p1 = por %p766_p0, %p765_p13 }
  0x30   : > { %p761_p12 = pneg %p760_p11 }
  0x32   : > { %p768_p4 = pnand %p767_p1, %p761_p12 }
  0x34   : > { %771 = shalt.err (!%p768_p4)
}
  0x35   : > { %696 = dma.hbm_to_vmem [thread:$0]  (!%p844_p5), %s950_s3, 2048, %s848_s24, [#allocation5], %s790_s9, %s790_s9, %s791_s10  }
  0x36   : > { %p957_p6 = scmp.ne.s32.totalorder %s955_s22, 0 }
  0x37   : > { %p958_p2 = scmp.eq.s32.totalorder (!%p957_p6), %s831_s19, 0 }
  0x38   : > { %212 = sbr.rel (%p957_p6) target bundleno = 534 (0x216), region = 40 }
  0x3f   : > { %777 = dma.done.wait (%p958_p2), [#allocation3], 2048   ;;  %p959_p7 = pmov %p958_p2 }
  0x40   : > { %p960_p3 = pmov %p958_p2 }
  0x41   : > { %779 = vsyncadd (%p959_p7), [#allocation3], 4294965248 }
  0x42   : > { %781 = dma.done.wait (%p960_p3), [#allocation5], 2048   ;;  %p961_p8 = pmov %p958_p2 }
  0x43   : > { %v792_v0 = vmov 0.0|0.0   ;;  %vm793_vm0 = vmmov 0   ;;  %v794_v1 = vmov 0.0   ;;  %v251_v2 = vld [vmem:[#allocation2] sm:$0xff]  ;;  %v252_v3 = vld [vmem:[#allocation2 + $0x8] sm:$0xff]  ;;  %v253_v4 = vld [vmem:[#allocation2 + $0x10] sm:$0xff] }
  0x44   : > { %783 = vsyncadd (%p961_p8), [#allocation5], 4294965248  ;;  %634 = vmatprep.subr.bf16.mxu0 %v792_v0  ;;  %596 = vmatprep.mubr.msk.f32.mxu0 %vm793_vm0, %v794_v1  ;;  %v635_v5 = vpack.c.bf16 %v252_v3, %v251_v2  ;;  %v254_v6 = vld [vmem:[#allocation2 + $0x18] sm:$0xff]  ;;  %v255_v8 = vld [vmem:[#allocation2 + $0x20] sm:$0xff]  ;;  %p242_p5 = scmp.lt.s32.totalorder %s831_s19, 1 }
  0x45   : > { %658 = vmatprep.subr.bf16.mxu1 %v792_v0  ;;  %631 = vmatprep.mubr.msk.f32.mxu1 %vm793_vm0, %v794_v1  ;;  %v638_v7 = vpack.c.bf16 %v254_v6, %v253_v4  ;;  %v256_v9 = vld [vmem:[#allocation2 + $0x28] sm:$0xff]  ;;  %v345_v10 = vld [vmem:[#allocation4] sm:$0xff]  ;;  %v347_v12 = vld [vmem:[#allocation4 + $0x10] sm:$0xff] }
  0x46   : > { %636 = vmatpush3.bf16.msra.mxu0 %v635_v5  ;;  %v346_v11 = vld [vmem:[#allocation4 + $0x8] sm:$0xff]  ;;  %v348_v13 = vld [vmem:[#allocation4 + $0x18] sm:$0xff]  ;;  %v641_v14 = vpack.c.bf16 %v256_v9, %v255_v8  ;;  %v257_v16 = vld [vmem:[#allocation2 + $0x30] sm:$0xff]  ;;  %s963_s19 = smov (!%p242_p5, %s831_s19), 1 }
  0x47   : > { %637 = vmatprep.subr.bf16.mxu0 %v792_v0  ;;  %v659_v15 = vpack.c.bf16 %v346_v11, %v345_v10  ;;  %v258_v17 = vld [vmem:[#allocation2 + $0x38] sm:$0xff]  ;;  %v662_v18 = vpack.c.bf16 %v348_v13, %v347_v12  ;;  %v349_v19 = vld [vmem:[#allocation4 + $0x20] sm:$0xff]  ;;  %v350_v20 = vld [vmem:[#allocation4 + $0x28] sm:$0xff]  ;;  %s524_s22 = sshll.u32 %s963_s19, 3 }
  0x48   : > { %v644_v21 = vpack.c.bf16 %v258_v17, %v257_v16  ;;  %v259_v22 = vld [vmem:[#allocation2 + $0x40] sm:$0xff]  ;;  %v260_v23 = vld [vmem:[#allocation2 + $0x48] sm:$0xff]  ;;  %v665_v24 = vpack.c.bf16 %v350_v20, %v349_v19  ;;  %v351_v25 = vld [vmem:[#allocation4 + $0x30] sm:$0xff]  ;;  %s245_s28 = scalar_lea.vmem %s947_s0, %s524_s22  ;;  %s249_s10 = scalar_lea.vmem %s952_s5, %s524_s22 }
  0x49   : > { %660 = vmatpush3.bf16.msra.mxu1 %v659_v15  ;;  %v352_v26 = vld [vmem:[#allocation4 + $0x38] sm:$0xff]  ;;  %v647_v27 = vpack.c.bf16 %v260_v23, %v259_v22  ;;  %v261_v28 = vld [vmem:[#allocation2 + $0x50] sm:$0xff]  ;;  %v353_v31 = vld [vmem:[#allocation4 + $0x40] sm:$0xff] }
  0x4a   : > { %639 = vmatpush3.bf16.msra.mxu0 %v638_v7  ;;  %661 = vmatprep.subr.bf16.mxu1 %v792_v0  ;;  %v262_v29 = vld [vmem:[#allocation2 + $0x58] sm:$0xff]  ;;  %v668_v30 = vpack.c.bf16 %v352_v26, %v351_v25  ;;  %v354_v32 = vld [vmem:[#allocation4 + $0x48] sm:$0xff]  ;;  %v263_v34 = vld [vmem:[#allocation2 + $0x60] sm:$0xff] }
  0x4b   : > { %640 = vmatprep.subr.bf16.mxu0 %v792_v0  ;;  %v650_v33 = vpack.c.bf16 %v262_v29, %v261_v28  ;;  %v264_v35 = vld [vmem:[#allocation2 + $0x68] sm:$0xff]  ;;  %v671_v36 = vpack.c.bf16 %v354_v32, %v353_v31  ;;  %v355_v37 = vld [vmem:[#allocation4 + $0x50] sm:$0xff]  ;;  %v356_v38 = vld [vmem:[#allocation4 + $0x58] sm:$0xff] }
  0x4c   : > { %v653_v39 = vpack.c.bf16 %v264_v35, %v263_v34  ;;  %v265_v40 = vld [vmem:[#allocation2 + $0x70] sm:$0xff]  ;;  %v266_v41 = vld [vmem:[#allocation2 + $0x78] sm:$0xff]  ;;  %v674_v42 = vpack.c.bf16 %v356_v38, %v355_v37  ;;  %v357_v43 = vld [vmem:[#allocation4 + $0x60] sm:$0xff] }
  0x4d   : > { %663 = vmatpush3.bf16.msra.mxu1 %v662_v18  ;;  %v358_v44 = vld [vmem:[#allocation4 + $0x68] sm:$0xff]  ;;  %v656_v45 = vpack.c.bf16 %v266_v41, %v265_v40  ;;  %v250_v47 = vld [vmem:[%s245_s28] sm:$0xff]  ;;  %v359_v48 = vld [vmem:[#allocation4 + $0x70] sm:$0xff] }
  0x4e   : > { %642 = vmatpush3.bf16.msra.mxu0 %v641_v14  ;;  %664 = vmatprep.subr.bf16.mxu1 %v792_v0  ;;  %v677_v46 = vpack.c.bf16 %v358_v44, %v357_v43  ;;  %v360_v49 = vld [vmem:[#allocation4 + $0x78] sm:$0xff]  ;;  %v526_v51 = vld [vmem:[%s949_s2] ss:$0 sm:$0xff] }
  0x4f   : > { %643 = vmatprep.subr.bf16.mxu0 %v792_v0  ;;  %v680_v50 = vpack.c.bf16 %v360_v49, %v359_v48  ;;  %v527_v56 = vld [vmem:[%s951_s4] ss:$0 sm:$0xff] }
  0x51   : > { %666 = vmatpush3.bf16.msra.mxu1 %v665_v24 }
  0x52   : > { %645 = vmatpush3.bf16.msra.mxu0 %v644_v21  ;;  %667 = vmatprep.subr.bf16.mxu1 %v792_v0 }
  0x53   : > { %646 = vmatprep.subr.bf16.mxu0 %v792_v0 }
  0x55   : > { %669 = vmatpush3.bf16.msra.mxu1 %v668_v30 }
  0x56   : > { %648 = vmatpush3.bf16.msra.mxu0 %v647_v27  ;;  %670 = vmatprep.subr.bf16.mxu1 %v792_v0 }
  0x57   : > { %649 = vmatprep.subr.bf16.mxu0 %v792_v0 }
  0x59   : > { %672 = vmatpush3.bf16.msra.mxu1 %v671_v36 }
  0x5a   : > { %651 = vmatpush3.bf16.msra.mxu0 %v650_v33  ;;  %673 = vmatprep.subr.bf16.mxu1 %v792_v0 }
  0x5b   : > { %652 = vmatprep.subr.bf16.mxu0 %v792_v0 }
  0x5d   : > { %675 = vmatpush3.bf16.msra.mxu1 %v674_v42 }
  0x5e   : > { %654 = vmatpush3.bf16.msra.mxu0 %v653_v39  ;;  %676 = vmatprep.subr.bf16.mxu1 %v792_v0 }
  0x5f   : > { %655 = vmatprep.subr.bf16.mxu0 %v792_v0 }
  0x61   : > { %678 = vmatpush3.bf16.msra.mxu1 %v677_v46 }
  0x62   : > { %657 = vmatpush3.bf16.msra.mxu0 %v656_v45  ;;  %679 = vmatprep.subr.bf16.mxu1 %v792_v0 }
  0x65   : > { %597 = vmatmul.mubr.f32.vlgmr.msra.gmra.mrb[0].mxu0 %v250_v47  ;;  %681 = vmatpush3.bf16.msra.mxu1 %v680_v50 }
 0x138   : > { %v340_v52 = vpop.f32.mrb[0].mxu0 }
 0x139   : > { %v341_v53 = vadd.f32 %v526_v51, %v340_v52  ;;  %v598_v54 = vpop.f32.mrb[1].mxu0 }
 0x13b   : > { %v344_v55 = vmax.f32 %v341_v53, 0.0 }
 0x13d   : > { %632 = vmatmul.mubr.f32.vlgmr.msra.gmra.mrb[0].mxu1 %v344_v55 }
 0x210   : > { %v434_v57 = vpop.f32.mrb[0].mxu1 }
 0x211   : > { %v435_v58 = vadd.f32 %v527_v56, %v434_v57  ;;  %v633_v59 = vpop.f32.mrb[1].mxu1 }
 0x213   : > { %v438_v60 = vadd.f32 %v435_v58, %v250_v47 }
 0x215   : > { %439 = vst [vmem:[%s249_s10] sm:$0xff] %v438_v60 }
 0x216 PF: > { %s17_s18 = sadd.s32 1, %s786_s18  }
 0x217   : > { %p14_p9 = scmp.ge.s32.totalorder %s17_s18, 4  }
 0x219   :  { %16 = sbr.rel (!%p14_p9) target bundleno = 2 (0x2), region = 79 }
 0x220   :  { %459 = vsyncpa [#allocation3], 1 }
 0x221   :  { %461 = vsyncpa [#allocation3 + $0x1], 1 }
 0x222   :  { %462 = vsyncpa [#allocation5], 1 }

</bundles_post_ra>
